<compile_context>
chip_gen: v7x
topology: tpu7x:2x2x1
jax: 0.10.0
libtpu: 0.0.40
codegen_flags: <defaults>
</compile_context>

<pallas_src>
import math
import jax
import jax.numpy as jnp
from jax import lax
from jax.experimental import pallas as pl
from jax.experimental.pallas import tpu as pltpu

# ---------------- hyperparameters (small, consistent with the module) -------
N = 2        # batch
T = 8        # sequence length (power of two -> head-id via shift)
E = 32       # embedding_dim
H = 4        # num_heads
D = E // H   # per-head dim
V = 16       # vocab_size
LN_EPS = 1e-5
NEG_INF = float("-inf")


# ----------------------------- Pallas kernel --------------------------------
def transformer_kernel(xg_ref, wqkv_ref, bqkv_ref, wo_ref, bo_ref,
                       gamma_ref, beta_ref, wout_ref, bout_ref,
                       out_ref, attn_ref):
    xg = xg_ref[...]                                            # [N*T, E]

    # Fused QKV projection: single [N*T, E] @ [E, 3E] MXU push.
    qkv = jnp.dot(xg, wqkv_ref[...],
                  preferred_element_type=jnp.float32) + bqkv_ref[...]
    q = qkv[:, :E]
    k = qkv[:, E:2 * E]
    v = qkv[:, 2 * E:]

    scale = 1.0 / math.sqrt(D)

    # Block-diagonal head mask (constant across batch). T is a power of two,
    # so head-id = row >> log2(T).
    log2_t = T.bit_length() - 1
    row = lax.broadcasted_iota(jnp.int32, (H * T, H * T), 0)
    col = lax.broadcasted_iota(jnp.int32, (H * T, H * T), 1)
    same_head = lax.shift_right_logical(row, log2_t) == \
                lax.shift_right_logical(col, log2_t)

    ao_last_rows = []
    xg_last_rows = []
    for b in range(N):                                          # N = 2, unrolled
        qb = q[b * T:(b + 1) * T, :]                            # [T, E]
        kb = k[b * T:(b + 1) * T, :]
        vb = v[b * T:(b + 1) * T, :]

        # Stack heads along the sublane axis -> [H*T, D].
        q_st = jnp.concatenate([qb[:, h * D:(h + 1) * D] for h in range(H)], axis=0)
        k_st = jnp.concatenate([kb[:, h * D:(h + 1) * D] for h in range(H)], axis=0)
        v_st = jnp.concatenate([vb[:, h * D:(h + 1) * D] for h in range(H)], axis=0)

        # All heads' scores in one matmul; mask cross-head blocks before softmax.
        s = jnp.dot(q_st, k_st.T, preferred_element_type=jnp.float32) * scale
        s = jnp.where(same_head, s, NEG_INF)
        s = s - jnp.max(s, axis=-1, keepdims=True)
        p = jnp.exp(s)
        p = p / jnp.sum(p, axis=-1, keepdims=True)              # [H*T, H*T], block-diag

        attn_ref[b] = p.astype(attn_ref.dtype)                  # one wide store / batch

        o_st = jnp.dot(p, v_st, preferred_element_type=jnp.float32)   # [H*T, D]

        # Only the last query row feeds the LN + logits tail.
        ao_last = jnp.concatenate(
            [o_st[(h + 1) * T - 1:(h + 1) * T, :] for h in range(H)], axis=1)  # [1, E]
        ao_last_rows.append(ao_last)
        xg_last_rows.append(xg[(b + 1) * T - 1:(b + 1) * T, :])                # [1, E]

    ao_last_all = jnp.concatenate(ao_last_rows, axis=0)         # [N, E]
    xg_last_all = jnp.concatenate(xg_last_rows, axis=0)         # [N, E]

    # Output projection (only for the last time steps) + residual + LayerNorm.
    y_last = jnp.dot(ao_last_all, wo_ref[...],
                     preferred_element_type=jnp.float32) + bo_ref[...]
    res = y_last + xg_last_all
    mean = jnp.mean(res, axis=-1, keepdims=True)
    var = jnp.mean((res - mean) * (res - mean), axis=-1, keepdims=True)
    ln = (res - mean) * lax.rsqrt(var + LN_EPS) * gamma_ref[...] + beta_ref[...]

    # Final linear for both batch elements in one matmul + softmax over vocab.
    logits = jnp.dot(ln, wout_ref[...],
                     preferred_element_type=jnp.float32) + bout_ref[...]       # [N, V]
    logits = logits - jnp.max(logits, axis=-1, keepdims=True)
    pz = jnp.exp(logits)
    out_ref[...] = (pz / jnp.sum(pz, axis=-1, keepdims=True)).astype(out_ref.dtype)


# ------------------------------ wrapper --------------------------------------
def transformer_forward(x_tokens, params):
    # GloVe embedding lookup (glue, plain JAX).
    x_glove = jnp.take(params["emb"], x_tokens, axis=0)         # [N, T, E]
    n, t, e = x_glove.shape
    v = params["wout"].shape[1]

    # Note: the torch forward computes positionalencoding() but never adds it,
    # so it is omitted here (it has no effect on the output).
    xg_flat = x_glove.reshape(n * t, e)                         # [N*T, E]
    wqkv = jnp.concatenate([params["wq"], params["wk"], params["wv"]], axis=1)  # [E, 3E]
    bqkv = jnp.concatenate([params["bq"], params["bk"], params["bv"]], axis=1)  # [1, 3E]

    vmem = pl.BlockSpec(memory_space=pltpu.MemorySpace.VMEM)
    out, attn_full = pl.pallas_call(
        transformer_kernel,
        out_shape=(
            jax.ShapeDtypeStruct((n, v), jnp.float32),
            jax.ShapeDtypeStruct((n, H * t, H * t), jnp.float32),
        ),
        in_specs=[vmem] * 9,
        out_specs=(vmem, vmem),
    )(
        xg_flat, wqkv, bqkv,
        params["wo"], params["bo"],
        params["gamma"], params["beta"],
        params["wout"], params["bout"],
    )

    # Extract the per-head [T, T] diagonal blocks (plain JAX glue; fused by XLA).
    p5 = attn_full.reshape(n, H, t, H, t)
    idx = jnp.arange(H)
    attn = jnp.transpose(p5[:, idx, :, idx, :], (1, 0, 2, 3))   # [N, H, T, T]
    return out, attn


# --------------------------- pure-JAX reference ------------------------------
def reference_forward(x_tokens, params):
    xg = jnp.take(params["emb"], x_tokens, axis=0)              # [N, T, E]
    n, t, e = xg.shape
    q = xg @ params["wq"] + params["bq"]
    k = xg @ params["wk"] + params["bk"]
    v = xg @ params["wv"] + params["bv"]

    def split(z):
        return z.reshape(n, t, H, D).transpose(0, 2, 1, 3)      # [N, H, T, D]

    qh, kh, vh = split(q), split(k), split(v)
    s = jnp.einsum("nhtd,nhsd->nhts", qh, kh) / math.sqrt(D)
    p = jax.nn.softmax(s, axis=-1)                              # [N, H, T, T]
    ao = jnp.einsum("nhts,nhsd->nhtd", p, vh)
    ao = ao.transpose(0, 2, 1, 3).reshape(n, t, e)
    y = ao @ params["wo"] + params["bo"]
    res = y + xg
    mean = jnp.mean(res, axis=-1, keepdims=True)
    var = jnp.mean((res - mean) ** 2, axis=-1, keepdims=True)
    ln = (res - mean) * jax.lax.rsqrt(var + LN_EPS) * params["gamma"] + params["beta"]
    logits = ln[:, -1, :] @ params["wout"] + params["bout"]
    return jax.nn.softmax(logits, axis=-1), p


# ------------------------------- main ----------------------------------------
if __name__ == "__main__":
    key = jax.random.PRNGKey(0)
    keys = jax.random.split(key, 16)

    params = {
        "emb":   0.1 * jax.random.normal(keys[0], (V, E), jnp.float32),  # GloVe table (synthetic)
        "wq":    0.1 * jax.random.normal(keys[1], (E, E), jnp.float32),
        "bq":    0.1 * jax.random.normal(keys[2], (1, E), jnp.float32),
        "wk":    0.1 * jax.random.normal(keys[3], (E, E), jnp.float32),
        "bk":    0.1 * jax.random.normal(keys[4], (1, E), jnp.float32),
        "wv":    0.1 * jax.random.normal(keys[5], (E, E), jnp.float32),
        "bv":    0.1 * jax.random.normal(keys[6], (1, E), jnp.float32),
        "wo":    0.1 * jax.random.normal(keys[7], (E, E), jnp.float32),
        "bo":    0.1 * jax.random.normal(keys[8], (1, E), jnp.float32),
        "gamma": jnp.ones((1, E), jnp.float32),
        "beta":  jnp.zeros((1, E), jnp.float32),
        "wout":  0.1 * jax.random.normal(keys[9], (E, V), jnp.float32),
        "bout":  0.1 * jax.random.normal(keys[10], (1, V), jnp.float32),
    }

    x_tokens = jax.random.randint(keys[11], (N, T), 0, V, dtype=jnp.int32)

    out, attn = transformer_forward(x_tokens, params)
    out = jax.block_until_ready(out)
    attn = jax.block_until_ready(attn)

    ref_out, ref_attn = reference_forward(x_tokens, params)
    assert out.shape == (N, V) and attn.shape == (N, H, T, T)
    assert jnp.allclose(out, ref_out, atol=1e-5, rtol=1e-4)
    assert jnp.allclose(attn, ref_attn, atol=1e-5, rtol=1e-4)

    print("KERNEL_OK")
</pallas_src>

<mosaic_0001>
module attributes {stable_mosaic.version = 11 : i64} {
  func.func @transformer_kernel(%arg0: memref<16x32xf32, #tpu.memory_space<vmem>>, %arg1: memref<32x96xf32, #tpu.memory_space<vmem>>, %arg2: memref<1x96xf32, #tpu.memory_space<vmem>>, %arg3: memref<32x32xf32, #tpu.memory_space<vmem>>, %arg4: memref<1x32xf32, #tpu.memory_space<vmem>>, %arg5: memref<1x32xf32, #tpu.memory_space<vmem>>, %arg6: memref<1x32xf32, #tpu.memory_space<vmem>>, %arg7: memref<32x16xf32, #tpu.memory_space<vmem>>, %arg8: memref<1x16xf32, #tpu.memory_space<vmem>>, %arg9: memref<2x16xf32, #tpu.memory_space<vmem>>, %arg10: memref<2x32x32xf32, #tpu.memory_space<vmem>>) attributes {dimension_semantics = [], scalar_prefetch = 0 : i64, scratch_operands = 0 : i64, tpu.core_type = #tpu.core_type<tc>} {
    %c0 = arith.constant 0 : index
    %c0_0 = arith.constant 0 : index
    %0 = vector.load %arg0[%c0, %c0_0] : memref<16x32xf32, #tpu.memory_space<vmem>>, vector<16x32xf32>
    %c0_1 = arith.constant 0 : index
    %c0_2 = arith.constant 0 : index
    %1 = vector.load %arg1[%c0_1, %c0_2] : memref<32x96xf32, #tpu.memory_space<vmem>>, vector<32x96xf32>
    %cst = arith.constant dense<0.000000e+00> : vector<16x96xf32>
    %2 = tpu.matmul %0, %1, %cst {dimension_numbers = #tpu.dot_dimension_numbers<[1], [0], [0], [1], [0, 0, 1, 1], [], []>} : vector<16x32xf32>, vector<32x96xf32>, vector<16x96xf32> -> vector<16x96xf32>
    %c0_3 = arith.constant 0 : index
    %c0_4 = arith.constant 0 : index
    %3 = vector.load %arg2[%c0_3, %c0_4] : memref<1x96xf32, #tpu.memory_space<vmem>>, vector<1x96xf32>
    %4 = vector.broadcast %3 : vector<1x96xf32> to vector<16x96xf32>
    %5 = arith.addf %2, %4 : vector<16x96xf32>
    %6 = vector.extract_strided_slice %5 {offsets = [0, 0], sizes = [16, 32], strides = [1, 1]} : vector<16x96xf32> to vector<16x32xf32>
    %7 = vector.extract_strided_slice %5 {offsets = [0, 32], sizes = [16, 32], strides = [1, 1]} : vector<16x96xf32> to vector<16x32xf32>
    %8 = vector.extract_strided_slice %5 {offsets = [0, 64], sizes = [16, 32], strides = [1, 1]} : vector<16x96xf32> to vector<16x32xf32>
    %9 = tpu.iota {dimensions = array<i32: 0>} : vector<32x32xi32>
    %10 = tpu.iota {dimensions = array<i32: 1>} : vector<32x32xi32>
    %c3_i32 = arith.constant 3 : i32
    %11 = vector.broadcast %c3_i32 : i32 to vector<32x32xi32>
    %12 = arith.shrui %9, %11 : vector<32x32xi32>
    %c3_i32_5 = arith.constant 3 : i32
    %13 = vector.broadcast %c3_i32_5 : i32 to vector<32x32xi32>
    %14 = arith.shrui %10, %13 : vector<32x32xi32>
    %15 = arith.cmpi eq, %12, %14 : vector<32x32xi32>
    %16 = vector.extract_strided_slice %6 {offsets = [0, 0], sizes = [8, 32], strides = [1, 1]} : vector<16x32xf32> to vector<8x32xf32>
    %17 = vector.extract_strided_slice %7 {offsets = [0, 0], sizes = [8, 32], strides = [1, 1]} : vector<16x32xf32> to vector<8x32xf32>
    %18 = vector.extract_strided_slice %8 {offsets = [0, 0], sizes = [8, 32], strides = [1, 1]} : vector<16x32xf32> to vector<8x32xf32>
    %19 = vector.extract_strided_slice %16 {offsets = [0, 0], sizes = [8, 8], strides = [1, 1]} : vector<8x32xf32> to vector<8x8xf32>
    %20 = vector.extract_strided_slice %16 {offsets = [0, 8], sizes = [8, 8], strides = [1, 1]} : vector<8x32xf32> to vector<8x8xf32>
    %21 = vector.extract_strided_slice %16 {offsets = [0, 16], sizes = [8, 8], strides = [1, 1]} : vector<8x32xf32> to vector<8x8xf32>
    %22 = vector.extract_strided_slice %16 {offsets = [0, 24], sizes = [8, 8], strides = [1, 1]} : vector<8x32xf32> to vector<8x8xf32>
    %23 = tpu.concatenate %19, %20, %21, %22 in 0 : vector<8x8xf32>, vector<8x8xf32>, vector<8x8xf32>, vector<8x8xf32> -> vector<32x8xf32>
    %24 = vector.extract_strided_slice %17 {offsets = [0, 0], sizes = [8, 8], strides = [1, 1]} : vector<8x32xf32> to vector<8x8xf32>
    %25 = vector.extract_strided_slice %17 {offsets = [0, 8], sizes = [8, 8], strides = [1, 1]} : vector<8x32xf32> to vector<8x8xf32>
    %26 = vector.extract_strided_slice %17 {offsets = [0, 16], sizes = [8, 8], strides = [1, 1]} : vector<8x32xf32> to vector<8x8xf32>
    %27 = vector.extract_strided_slice %17 {offsets = [0, 24], sizes = [8, 8], strides = [1, 1]} : vector<8x32xf32> to vector<8x8xf32>
    %28 = tpu.concatenate %24, %25, %26, %27 in 0 : vector<8x8xf32>, vector<8x8xf32>, vector<8x8xf32>, vector<8x8xf32> -> vector<32x8xf32>
    %29 = vector.extract_strided_slice %18 {offsets = [0, 0], sizes = [8, 8], strides = [1, 1]} : vector<8x32xf32> to vector<8x8xf32>
    %30 = vector.extract_strided_slice %18 {offsets = [0, 8], sizes = [8, 8], strides = [1, 1]} : vector<8x32xf32> to vector<8x8xf32>
    %31 = vector.extract_strided_slice %18 {offsets = [0, 16], sizes = [8, 8], strides = [1, 1]} : vector<8x32xf32> to vector<8x8xf32>
    %32 = vector.extract_strided_slice %18 {offsets = [0, 24], sizes = [8, 8], strides = [1, 1]} : vector<8x32xf32> to vector<8x8xf32>
    %33 = tpu.concatenate %29, %30, %31, %32 in 0 : vector<8x8xf32>, vector<8x8xf32>, vector<8x8xf32>, vector<8x8xf32> -> vector<32x8xf32>
    %34 = tpu.transpose %28, [1, 0] : vector<32x8xf32> -> vector<8x32xf32>
    %cst_6 = arith.constant dense<0.000000e+00> : vector<32x32xf32>
    %35 = tpu.matmul %23, %34, %cst_6 {dimension_numbers = #tpu.dot_dimension_numbers<[1], [0], [0], [1], [0, 0, 1, 1], [], []>} : vector<32x8xf32>, vector<8x32xf32>, vector<32x32xf32> -> vector<32x32xf32>
    %cst_7 = arith.constant 0.353553385 : f32
    %36 = vector.broadcast %cst_7 : f32 to vector<32x32xf32>
    %37 = arith.mulf %35, %36 : vector<32x32xf32>
    %cst_8 = arith.constant 0xFF800000 : f32
    %38 = vector.broadcast %cst_8 : f32 to vector<32x32xf32>
    %39 = arith.select %15, %37, %38 : vector<32x32xi1>, vector<32x32xf32>
    %cst_9 = arith.constant dense<0xFF800000> : vector<32xf32>
    %40 = vector.multi_reduction <maximumf>, %39, %cst_9 [1] : vector<32x32xf32> to vector<32xf32>
    %41 = vector.shape_cast %40 : vector<32xf32> to vector<32x1xf32>
    %42 = vector.broadcast %41 : vector<32x1xf32> to vector<32x32xf32>
    %43 = arith.subf %39, %42 : vector<32x32xf32>
    %44 = math.exp %43 : vector<32x32xf32>
    %cst_10 = arith.constant dense<0.000000e+00> : vector<32xf32>
    %45 = vector.multi_reduction <add>, %44, %cst_10 [1] : vector<32x32xf32> to vector<32xf32>
    %46 = vector.shape_cast %45 : vector<32xf32> to vector<32x1xf32>
    %47 = vector.broadcast %46 : vector<32x1xf32> to vector<32x32xf32>
    %48 = arith.divf %44, %47 : vector<32x32xf32>
    %c0_11 = arith.constant 0 : index
    %c0_12 = arith.constant 0 : index
    %c0_13 = arith.constant 0 : index
    %49 = vector.load %arg10[%c0_11, %c0_12, %c0_13] : memref<2x32x32xf32, #tpu.memory_space<vmem>>, vector<1x32x32xf32>
    %50 = vector.shape_cast %49 : vector<1x32x32xf32> to vector<32x32xf32>
    %51 = vector.shape_cast %48 : vector<32x32xf32> to vector<1x32x32xf32>
    tpu.vector_store %arg10[%c0_11, %c0_12, %c0_13], %51 {strides = array<i32>} : memref<2x32x32xf32, #tpu.memory_space<vmem>>, vector<1x32x32xf32>,
    %cst_14 = arith.constant dense<0.000000e+00> : vector<32x8xf32>
    %52 = tpu.matmul %48, %33, %cst_14 {dimension_numbers = #tpu.dot_dimension_numbers<[1], [0], [0], [1], [0, 0, 1, 1], [], []>} : vector<32x32xf32>, vector<32x8xf32>, vector<32x8xf32> -> vector<32x8xf32>
    %53 = vector.extract_strided_slice %52 {offsets = [7, 0], sizes = [1, 8], strides = [1, 1]} : vector<32x8xf32> to vector<1x8xf32>
    %54 = vector.extract_strided_slice %52 {offsets = [15, 0], sizes = [1, 8], strides = [1, 1]} : vector<32x8xf32> to vector<1x8xf32>
    %55 = vector.extract_strided_slice %52 {offsets = [23, 0], sizes = [1, 8], strides = [1, 1]} : vector<32x8xf32> to vector<1x8xf32>
    %56 = vector.extract_strided_slice %52 {offsets = [31, 0], sizes = [1, 8], strides = [1, 1]} : vector<32x8xf32> to vector<1x8xf32>
    %57 = tpu.concatenate %53, %54, %55, %56 in 1 : vector<1x8xf32>, vector<1x8xf32>, vector<1x8xf32>, vector<1x8xf32> -> vector<1x32xf32>
    %58 = vector.extract_strided_slice %0 {offsets = [7, 0], sizes = [1, 32], strides = [1, 1]} : vector<16x32xf32> to vector<1x32xf32>
    %59 = vector.extract_strided_slice %6 {offsets = [8, 0], sizes = [8, 32], strides = [1, 1]} : vector<16x32xf32> to vector<8x32xf32>
    %60 = vector.extract_strided_slice %7 {offsets = [8, 0], sizes = [8, 32], strides = [1, 1]} : vector<16x32xf32> to vector<8x32xf32>
    %61 = vector.extract_strided_slice %8 {offsets = [8, 0], sizes = [8, 32], strides = [1, 1]} : vector<16x32xf32> to vector<8x32xf32>
    %62 = vector.extract_strided_slice %59 {offsets = [0, 0], sizes = [8, 8], strides = [1, 1]} : vector<8x32xf32> to vector<8x8xf32>
    %63 = vector.extract_strided_slice %59 {offsets = [0, 8], sizes = [8, 8], strides = [1, 1]} : vector<8x32xf32> to vector<8x8xf32>
    %64 = vector.extract_strided_slice %59 {offsets = [0, 16], sizes = [8, 8], strides = [1, 1]} : vector<8x32xf32> to vector<8x8xf32>
    %65 = vector.extract_strided_slice %59 {offsets = [0, 24], sizes = [8, 8], strides = [1, 1]} : vector<8x32xf32> to vector<8x8xf32>
    %66 = tpu.concatenate %62, %63, %64, %65 in 0 : vector<8x8xf32>, vector<8x8xf32>, vector<8x8xf32>, vector<8x8xf32> -> vector<32x8xf32>
    %67 = vector.extract_strided_slice %60 {offsets = [0, 0], sizes = [8, 8], strides = [1, 1]} : vector<8x32xf32> to vector<8x8xf32>
    %68 = vector.extract_strided_slice %60 {offsets = [0, 8], sizes = [8, 8], strides = [1, 1]} : vector<8x32xf32> to vector<8x8xf32>
    %69 = vector.extract_strided_slice %60 {offsets = [0, 16], sizes = [8, 8], strides = [1, 1]} : vector<8x32xf32> to vector<8x8xf32>
    %70 = vector.extract_strided_slice %60 {offsets = [0, 24], sizes = [8, 8], strides = [1, 1]} : vector<8x32xf32> to vector<8x8xf32>
    %71 = tpu.concatenate %67, %68, %69, %70 in 0 : vector<8x8xf32>, vector<8x8xf32>, vector<8x8xf32>, vector<8x8xf32> -> vector<32x8xf32>
    %72 = vector.extract_strided_slice %61 {offsets = [0, 0], sizes = [8, 8], strides = [1, 1]} : vector<8x32xf32> to vector<8x8xf32>
    %73 = vector.extract_strided_slice %61 {offsets = [0, 8], sizes = [8, 8], strides = [1, 1]} : vector<8x32xf32> to vector<8x8xf32>
    %74 = vector.extract_strided_slice %61 {offsets = [0, 16], sizes = [8, 8], strides = [1, 1]} : vector<8x32xf32> to vector<8x8xf32>
    %75 = vector.extract_strided_slice %61 {offsets = [0, 24], sizes = [8, 8], strides = [1, 1]} : vector<8x32xf32> to vector<8x8xf32>
    %76 = tpu.concatenate %72, %73, %74, %75 in 0 : vector<8x8xf32>, vector<8x8xf32>, vector<8x8xf32>, vector<8x8xf32> -> vector<32x8xf32>
    %77 = tpu.transpose %71, [1, 0] : vector<32x8xf32> -> vector<8x32xf32>
    %cst_15 = arith.constant dense<0.000000e+00> : vector<32x32xf32>
    %78 = tpu.matmul %66, %77, %cst_15 {dimension_numbers = #tpu.dot_dimension_numbers<[1], [0], [0], [1], [0, 0, 1, 1], [], []>} : vector<32x8xf32>, vector<8x32xf32>, vector<32x32xf32> -> vector<32x32xf32>
    %cst_16 = arith.constant 0.353553385 : f32
    %79 = vector.broadcast %cst_16 : f32 to vector<32x32xf32>
    %80 = arith.mulf %78, %79 : vector<32x32xf32>
    %cst_17 = arith.constant 0xFF800000 : f32
    %81 = vector.broadcast %cst_17 : f32 to vector<32x32xf32>
    %82 = arith.select %15, %80, %81 : vector<32x32xi1>, vector<32x32xf32>
    %cst_18 = arith.constant dense<0xFF800000> : vector<32xf32>
    %83 = vector.multi_reduction <maximumf>, %82, %cst_18 [1] : vector<32x32xf32> to vector<32xf32>
    %84 = vector.shape_cast %83 : vector<32xf32> to vector<32x1xf32>
    %85 = vector.broadcast %84 : vector<32x1xf32> to vector<32x32xf32>
    %86 = arith.subf %82, %85 : vector<32x32xf32>
    %87 = math.exp %86 : vector<32x32xf32>
    %cst_19 = arith.constant dense<0.000000e+00> : vector<32xf32>
    %88 = vector.multi_reduction <add>, %87, %cst_19 [1] : vector<32x32xf32> to vector<32xf32>
    %89 = vector.shape_cast %88 : vector<32xf32> to vector<32x1xf32>
    %90 = vector.broadcast %89 : vector<32x1xf32> to vector<32x32xf32>
    %91 = arith.divf %87, %90 : vector<32x32xf32>
    %c1 = arith.constant 1 : index
    %c0_20 = arith.constant 0 : index
    %c0_21 = arith.constant 0 : index
    %92 = vector.load %arg10[%c1, %c0_20, %c0_21] : memref<2x32x32xf32, #tpu.memory_space<vmem>>, vector<1x32x32xf32>
    %93 = vector.shape_cast %92 : vector<1x32x32xf32> to vector<32x32xf32>
    %94 = vector.shape_cast %91 : vector<32x32xf32> to vector<1x32x32xf32>
    tpu.vector_store %arg10[%c1, %c0_20, %c0_21], %94 {strides = array<i32>} : memref<2x32x32xf32, #tpu.memory_space<vmem>>, vector<1x32x32xf32>,
    %cst_22 = arith.constant dense<0.000000e+00> : vector<32x8xf32>
    %95 = tpu.matmul %91, %76, %cst_22 {dimension_numbers = #tpu.dot_dimension_numbers<[1], [0], [0], [1], [0, 0, 1, 1], [], []>} : vector<32x32xf32>, vector<32x8xf32>, vector<32x8xf32> -> vector<32x8xf32>
    %96 = vector.extract_strided_slice %95 {offsets = [7, 0], sizes = [1, 8], strides = [1, 1]} : vector<32x8xf32> to vector<1x8xf32>
    %97 = vector.extract_strided_slice %95 {offsets = [15, 0], sizes = [1, 8], strides = [1, 1]} : vector<32x8xf32> to vector<1x8xf32>
    %98 = vector.extract_strided_slice %95 {offsets = [23, 0], sizes = [1, 8], strides = [1, 1]} : vector<32x8xf32> to vector<1x8xf32>
    %99 = vector.extract_strided_slice %95 {offsets = [31, 0], sizes = [1, 8], strides = [1, 1]} : vector<32x8xf32> to vector<1x8xf32>
    %100 = tpu.concatenate %96, %97, %98, %99 in 1 : vector<1x8xf32>, vector<1x8xf32>, vector<1x8xf32>, vector<1x8xf32> -> vector<1x32xf32>
    %101 = vector.extract_strided_slice %0 {offsets = [15, 0], sizes = [1, 32], strides = [1, 1]} : vector<16x32xf32> to vector<1x32xf32>
    %102 = tpu.concatenate %57, %100 in 0 : vector<1x32xf32>, vector<1x32xf32> -> vector<2x32xf32>
    %103 = tpu.concatenate %58, %101 in 0 : vector<1x32xf32>, vector<1x32xf32> -> vector<2x32xf32>
    %c0_23 = arith.constant 0 : index
    %c0_24 = arith.constant 0 : index
    %104 = vector.load %arg3[%c0_23, %c0_24] : memref<32x32xf32, #tpu.memory_space<vmem>>, vector<32x32xf32>
    %cst_25 = arith.constant dense<0.000000e+00> : vector<2x32xf32>
    %105 = tpu.matmul %102, %104, %cst_25 {dimension_numbers = #tpu.dot_dimension_numbers<[1], [0], [0], [1], [0, 0, 1, 1], [], []>} : vector<2x32xf32>, vector<32x32xf32>, vector<2x32xf32> -> vector<2x32xf32>
    %c0_26 = arith.constant 0 : index
    %c0_27 = arith.constant 0 : index
    %106 = vector.load %arg4[%c0_26, %c0_27] : memref<1x32xf32, #tpu.memory_space<vmem>>, vector<1x32xf32>
    %107 = vector.broadcast %106 : vector<1x32xf32> to vector<2x32xf32>
    %108 = arith.addf %105, %107 : vector<2x32xf32>
    %109 = arith.addf %108, %103 : vector<2x32xf32>
    %cst_28 = arith.constant dense<0.000000e+00> : vector<2xf32>
    %110 = vector.multi_reduction <add>, %109, %cst_28 [1] : vector<2x32xf32> to vector<2xf32>
    %111 = vector.shape_cast %110 : vector<2xf32> to vector<2x1xf32>
    %cst_29 = arith.constant 3.200000e+01 : f32
    %112 = vector.broadcast %cst_29 : f32 to vector<2x1xf32>
    %113 = arith.divf %111, %112 : vector<2x1xf32>
    %114 = vector.broadcast %113 : vector<2x1xf32> to vector<2x32xf32>
    %115 = arith.subf %109, %114 : vector<2x32xf32>
    %116 = vector.broadcast %113 : vector<2x1xf32> to vector<2x32xf32>
    %117 = arith.subf %109, %116 : vector<2x32xf32>
    %118 = arith.mulf %115, %117 : vector<2x32xf32>
    %cst_30 = arith.constant dense<0.000000e+00> : vector<2xf32>
    %119 = vector.multi_reduction <add>, %118, %cst_30 [1] : vector<2x32xf32> to vector<2xf32>
    %120 = vector.shape_cast %119 : vector<2xf32> to vector<2x1xf32>
    %cst_31 = arith.constant 3.200000e+01 : f32
    %121 = vector.broadcast %cst_31 : f32 to vector<2x1xf32>
    %122 = arith.divf %120, %121 : vector<2x1xf32>
    %123 = vector.broadcast %113 : vector<2x1xf32> to vector<2x32xf32>
    %124 = arith.subf %109, %123 : vector<2x32xf32>
    %cst_32 = arith.constant 9.99999974E-6 : f32
    %125 = vector.broadcast %cst_32 : f32 to vector<2x1xf32>
    %126 = arith.addf %122, %125 : vector<2x1xf32>
    %127 = math.rsqrt %126 : vector<2x1xf32>
    %128 = vector.broadcast %127 : vector<2x1xf32> to vector<2x32xf32>
    %129 = arith.mulf %124, %128 : vector<2x32xf32>
    %c0_33 = arith.constant 0 : index
    %c0_34 = arith.constant 0 : index
    %130 = vector.load %arg5[%c0_33, %c0_34] : memref<1x32xf32, #tpu.memory_space<vmem>>, vector<1x32xf32>
    %131 = vector.broadcast %130 : vector<1x32xf32> to vector<2x32xf32>
    %132 = arith.mulf %129, %131 : vector<2x32xf32>
    %c0_35 = arith.constant 0 : index
    %c0_36 = arith.constant 0 : index
    %133 = vector.load %arg6[%c0_35, %c0_36] : memref<1x32xf32, #tpu.memory_space<vmem>>, vector<1x32xf32>
    %134 = vector.broadcast %133 : vector<1x32xf32> to vector<2x32xf32>
    %135 = arith.addf %132, %134 : vector<2x32xf32>
    %c0_37 = arith.constant 0 : index
    %c0_38 = arith.constant 0 : index
    %136 = vector.load %arg7[%c0_37, %c0_38] : memref<32x16xf32, #tpu.memory_space<vmem>>, vector<32x16xf32>
    %cst_39 = arith.constant dense<0.000000e+00> : vector<2x16xf32>
    %137 = tpu.matmul %135, %136, %cst_39 {dimension_numbers = #tpu.dot_dimension_numbers<[1], [0], [0], [1], [0, 0, 1, 1], [], []>} : vector<2x32xf32>, vector<32x16xf32>, vector<2x16xf32> -> vector<2x16xf32>
    %c0_40 = arith.constant 0 : index
    %c0_41 = arith.constant 0 : index
    %138 = vector.load %arg8[%c0_40, %c0_41] : memref<1x16xf32, #tpu.memory_space<vmem>>, vector<1x16xf32>
    %139 = vector.broadcast %138 : vector<1x16xf32> to vector<2x16xf32>
    %140 = arith.addf %137, %139 : vector<2x16xf32>
    %cst_42 = arith.constant dense<0xFF800000> : vector<2xf32>
    %141 = vector.multi_reduction <maximumf>, %140, %cst_42 [1] : vector<2x16xf32> to vector<2xf32>
    %142 = vector.shape_cast %141 : vector<2xf32> to vector<2x1xf32>
    %143 = vector.broadcast %142 : vector<2x1xf32> to vector<2x16xf32>
    %144 = arith.subf %140, %143 : vector<2x16xf32>
    %145 = math.exp %144 : vector<2x16xf32>
    %cst_43 = arith.constant dense<0.000000e+00> : vector<2xf32>
    %146 = vector.multi_reduction <add>, %145, %cst_43 [1] : vector<2x16xf32> to vector<2xf32>
    %147 = vector.shape_cast %146 : vector<2xf32> to vector<2x1xf32>
    %148 = vector.broadcast %147 : vector<2x1xf32> to vector<2x16xf32>
    %149 = arith.divf %145, %148 : vector<2x16xf32>
    %c0_44 = arith.constant 0 : index
    %c0_45 = arith.constant 0 : index
    %150 = vector.load %arg9[%c0_44, %c0_45] : memref<2x16xf32, #tpu.memory_space<vmem>>, vector<2x16xf32>
    tpu.vector_store %arg9[%c0_44, %c0_45], %149 {strides = array<i32>} : memref<2x16xf32, #tpu.memory_space<vmem>>, vector<2x16xf32>,
    return
  }
}

</mosaic_0001>

<bundles_post_ra>
// kernel: tpu_custom_call.1
= control target key start
LH: loop header
LB: loop body
LE: loop exit
PB: predicated region body
PF: predicated region fallthrough
CT: control target
= control target key end

     0   :  { %16 = vsyncpa [#allocation3], 0  ;;  %s1727_s0 = inlined_call_operand.vmem [shape: f32[16,32], index: 0, kind: input, shape index: {}]   ;;  %s1728_s1 = inlined_call_operand.vmem [shape: f32[32,96], index: 1, kind: input, shape index: {}]   ;;  %s1729_s2 = inlined_call_operand.vmem [shape: f32[1,96], index: 2, kind: input, shape index: {}]   ;;  %s1730_s3 = inlined_call_operand.hbm [shape: f32[32,32], index: 3, kind: input, shape index: {}]   ;;  %s1731_s4 = inlined_call_operand.vmem [shape: f32[1,32], index: 4, kind: input, shape index: {}]   ;;  %s1732_s5 = inlined_call_operand.vmem [shape: f32[1,32], index: 5, kind: input, shape index: {}]   ;;  %s1733_s6 = inlined_call_operand.vmem [shape: f32[1,32], index: 6, kind: input, shape index: {}]   ;;  %s1734_s7 = inlined_call_operand.vmem [shape: f32[32,16], index: 7, kind: input, shape index: {}]   ;;  %s1735_s8 = inlined_call_operand.vmem [shape: f32[1,16], index: 8, kind: input, shape index: {}]   ;;  %s1736_s9 = inlined_call_operand.hbm [shape: f32[2,16], index: 9, kind: output, shape index: {0}]   ;;  %s1737_s10 = inlined_call_operand.hbm [shape: f32[2,32,32], index: 10, kind: output, shape index: {1}]  }
   0x1   :  { %17 = vsyncpa [#allocation4], 0 }
   0x2   :  { %18 = vsyncpa [#allocation7], 0  ;;  %s1409_s13 = smov [#allocation2]   ;;  %s1337_s17 = scalar_lea.hbm %s1730_s3, 512 }
   0x3   :  { %s30_s14 = sshll.u32 %s1409_s13, 4  ;;  %p1338_p0 = scmp.ne.s32.totalorder %s1730_s3, %s1337_s17  ;;  %s31_s14 = int_to_ptr.vmem [resolvable:$true] %s30_s14 }
   0x4   :  { %p1341_p1 = scmp.lt.u32.totalorder %s1337_s17, %s1730_s3 }
   0x6   :  { %p1343_p2 = pnand %p1341_p1, %p1338_p0 }
   0x8   :  { %1346 = shalt.err (!%p1343_p2)
}
   0x9   :  { %s1347_s22 = scalar_lea.vmem %s31_s14, 512  ;;  %p1352_p4 = scmp.lt.s32.totalorder %s31_s14, %s31_s14 }
   0xa   :  { %p1348_p3 = scmp.ne.s32.totalorder %s31_s14, %s1347_s22  ;;  %p1353_p5 = scmp.lt.s32.totalorder %s1347_s22, %s1347_s22 }
   0xc   :  { %p1354_p6 = por %p1353_p5, %p1352_p4 }
   0xe   :  { %p1355_p7 = pnand %p1354_p6, %p1348_p3 }
  0x10   :  { %1358 = shalt.err (!%p1355_p7)
}
  0x11   :  { %s1410_s23 = smov 128   ;;  %s1411_s24 = smov 8  }
  0x12   :  { %36 = dma.hbm_to_vmem [thread:$0]  %s1730_s3, 512, %s31_s14, [#allocation3], %s1410_s23, %s1410_s23, %s1411_s24  }
  0x13   :  { %1403 = dma.done.wait [#allocation3], 512  }
  0x14   :  { %1404 = vsyncadd [#allocation3], 4294966784  ;;  %vm63_vm0 = vcmask 261120   ;;  %v52_v0 = vld [vmem:[%s1728_s1] sm:$0xff]  ;;  %v53_v1 = vld [vmem:[%s1728_s1 + $0x8] sm:$0xff]  ;;  %vm176_vm1 = vcmask 64512   ;;  %v145_v27 = vlaneseq }
  0x15   :  { %v54_v2 = vld [vmem:[%s1728_s1 + $0x10] sm:$0xff]  ;;  %v1184_v3 = vpack.c.bf16 %v53_v1, %v52_v0  ;;  %v55_v4 = vld [vmem:[%s1728_s1 + $0x18] sm:$0xff]  ;;  %v1509_v5 = vld [vmem:[%s1727_s0] sm:$0xff]  ;;  %s1412_s19 = smov 104   ;;  %s1413_s20 = smov 120   ;;  %vm1420_vm7 = vmmov 0  }
  0x16   :  { %v1188_v6 = vpack.c.bf16 %v55_v4, %v54_v2  ;;  %1103 = vmatprep.mubr.msk.f32.mxu0 %vm63_vm0, %v1509_v5  ;;  %v1516_v7 = vld [vmem:[%s1727_s0 + $0x8] sm:$0xff]  ;;  %v1014_v8 = vld [vmem:[%s1729_s2] ss:$0 sm:$0xff]  ;;  %s1414_s0 = smov 112   ;;  %s1415_s2 = smov 96   ;;  %vm1536_vm2 = vmpackc.low %vm176_vm1, %vm176_vm1  ;;  %v146_v28 = vshrl.u32 %v145_v27, 7 }
  0x17   :  { %1185 = vmatprep.subr.bf16.mxu0 %v1184_v3  ;;  %v151_v30 = vand.u32 127, %v145_v27  ;;  %s1416_s21 = smov 64   ;;  %s1417_s22 = smov 16   ;;  %vm456_vm8 = vcmask 130048   ;;  %vm458_vm9 = vcmask 195584   ;;  %vm763_vm10 = vcmask 1040384  }
  0x18   :  { %1187 = vmatpush3.bf16.msra.mxu0 %v1184_v3  ;;  %v147_v29 = vadd.s32 8, %v146_v28  ;;  %v149_v33 = vadd.s32 24, %v146_v28  ;;  %v152_v34 = vshrl.u32 %v146_v28, 3  ;;  %v148_v35 = vadd.s32 16, %v146_v28  ;;  %s1418_s25 = smov 24  }
  0x19   :  { %1189 = vmatprep.subr.bf16.mxu0 %v1188_v6  ;;  %v156_v32 = vshrl.u32 %v151_v30, 3  ;;  %vm855_vm11 = vcmask 254976   ;;  %vm970_vm12 = vcmask 123904  }
  0x1a   :  { %v153_v31 = vshrl.u32 %v147_v29, 3  ;;  %v155_v38 = vshrl.u32 %v149_v33, 3  ;;  %v154_v42 = vshrl.u32 %v148_v35, 3 }
  0x1b   :  { %vm1555_vm4 = vcmp.eq.s32.totalorder %v152_v34, %v156_v32 }
  0x1c   :  { %1191 = vmatpush3.bf16.msra.mxu0 %v1188_v6  ;;  %vm1551_vm3 = vcmp.eq.s32.totalorder %v153_v31, %v156_v32  ;;  %vm1564_vm5 = vcmp.eq.s32.totalorder %v155_v38, %v156_v32  ;;  %vm1569_vm6 = vcmp.eq.s32.totalorder %v154_v42, %v156_v32 }
  0x1f   :  { %1104 = vmatmul.mubr.msk.f32.vlgmr.msra.gmra.mrb[0].mxu0 %vm63_vm0, %v1516_v7 }
  0xf2   :  { %v1105_v9 = vpop.f32.mrb[0].mxu0 }
  0xf3   :  { %v1523_v10 = vadd.f32 %v1105_v9, %v1014_v8  ;;  %v136_v11 = vpop.f32.mrb[1].mxu0 }
  0xf4   :  { %v137_v12 = vadd.f32 %v1014_v8, %v136_v11 }
  0xf6   :  { %166 = vrot.lane.b32.xlu1 %v137_v12, %s1412_s19  ;;  %162 = vrot.lane.b32.xlu0 %v137_v12, %s1413_s20 }
  0xf7   :  { %1114 = vmatprep.mubr.msk.f32.mxu1 %vm176_vm1, %v137_v12 }
  0xfa   :  { %164 = vrot.lane.b32.xlu0 %v137_v12, %s1414_s0 }
 0x168   :  { %v163_v13 = vpop.permute.xlu0 %162  ;;  %v167_v15 = vpop.permute.xlu1 %166 }
 0x169   :  { %v1259_v14 = vpack.i.bf16 %v163_v13, %v137_v12 }
 0x16b   :  { %1260 = vrot.lane.b32.xlu1 %v1259_v14, %s1415_s2 }
 0x16c   :  { %v165_v16 = vpop.permute.xlu0 %164 }
 0x16d   :  { %v1530_v17 = vpack.i.bf16 %v167_v15, %v165_v16 }
 0x16f   :  { %1265 = vrot.lane.b32.xlu0 %v1530_v17, %s1415_s2 }
 0x1dd   :  { %v1261_v18 = vpop.permute.xlu1 %1260 }
 0x1de   :  { %v1263_v19 = vunpack.i.h.bf16 %v1261_v18  ;;  %v1262_v20 = vunpack.i.l.bf16 %v1261_v18 }
 0x1e0   :  { %v1192_v22 = vpack.c.bf16 %v1263_v19, %v1262_v20 }
 0x1e1   :  { %v1266_v23 = vpop.permute.xlu0 %1265 }
 0x1e2   :  { %v1268_v24 = vunpack.i.h.bf16 %v1266_v23  ;;  %v1267_v25 = vunpack.i.l.bf16 %v1266_v23  ;;  %1194 = vmatprep.subr.msk.bf16.mxu1 %vm1536_vm2, %v1192_v22 }
 0x1e3   :  { %1197 = vmatpush3.bf16.xpose.msk.msra.mxu1 %vm1536_vm2, %v1192_v22 }
 0x1e4   :  { %v1198_v26 = vpack.c.bf16 %v1268_v24, %v1267_v25 }
 0x1e6   :  { %1200 = vmatprep.subr.msk.bf16.mxu1 %vm1536_vm2, %v1198_v26 }
 0x1eb   :  { %1203 = vmatpush3.bf16.xpose.msk.msra.mxu1 %vm1536_vm2, %v1198_v26 }
 0x1f2   :  { %1115 = vmatmul.mubr.msk.f32.vlgmr.msra.gmra.mrb[0].mxu1 %vm176_vm1, %v163_v13 }
 0x1f3   :  { %1117 = vmatprep.mubr.msk.f32.mxu1 %vm176_vm1, %v165_v16 }
 0x1f6   :  { %1118 = vmatmul.mubr.msk.f32.gmra.mrb[2].mxu1 %vm176_vm1, %v167_v15 }
 0x2c5   :  { %v1116_v36 = vpop.f32.mrb[0].mxu1 }
 0x2c6   :  { %v279_v39 = vmul.f32 0.35355338, %v1116_v36  ;;  %v259_v40 = vpop.f32.mrb[1].mxu1 }
 0x2c7   :  { %v278_v43 = vmul.f32 0.35355338, %v259_v40 }
 0x2c8   :  { %v283_v44 = vsel %vm1551_vm3, %v279_v39, -inf }
 0x2c9   :  { %v1119_v45 = vpop.f32.mrb[2].mxu1  ;;  %v289_v46 = vsel %vm63_vm0, %v283_v44, -inf  ;;  %v282_v47 = vsel %vm1555_vm4, %v278_v43, -inf }
 0x2ca   :  { %v281_v49 = vmul.f32 0.35355338, %v1119_v45  ;;  %290 = vmax.xlane.f32.xlu0 %v289_v46  ;;  %v269_v50 = vpop.f32.mrb[3].mxu1  ;;  %v286_v51 = vsel %vm63_vm0, %v282_v47, -inf }
 0x2cb   :  { %v280_v53 = vmul.f32 0.35355338, %v269_v50  ;;  %287 = vmax.xlane.f32.xlu1 %v286_v51 }
 0x2cc   :  { %v285_v54 = vsel %vm1564_vm5, %v281_v49, -inf }
 0x2cd   :  { %v295_v55 = vsel %vm63_vm0, %v285_v54, -inf  ;;  %v284_v56 = vsel %vm1569_vm6, %v280_v53, -inf }
 0x2ce   :  { %v292_v57 = vsel %vm63_vm0, %v284_v56, -inf }
 0x2cf   :  { %296 = vmax.xlane.f32.xlu1 %v295_v55  ;;  %293 = vmax.xlane.f32.xlu0 %v292_v57 }
 0x2e0   :  { %463 = vrot.lane.b32.xlu1 %v1523_v10, %s1414_s0 }
 0x2e4   :  { %465 = vrot.lane.b32.xlu1 %v1523_v10, %s1412_s19 }
 0x2e5   :  { %461 = vrot.lane.b32.xlu0 %v1523_v10, %s1413_s20 }
 0x2e8   :  { %1270 = vrot.lane.b32.xlu1 %v1259_v14, %s1416_s21 }
 0x357   :  { %v291_v58 = vpop.xlane.xlu0 %290 }
 0x358   :  { %v299_v59 = vsub.f32 %v283_v44, %v291_v58  ;;  %v288_v60 = vpop.xlane.xlu1 %287 }
 0x359   :  { %v298_v61 = vsub.f32 %v282_v47, %v288_v60 }
 0x35a   :  { %v304_v62 = vmul.f32 1.442695, %v299_v59 }
 0x35b   :  { %v302_v63 = vmul.f32 1.442695, %v298_v61 }
 0x35c   :  { %1299 = vpow2.f32 %v304_v62  ;;  %v297_v0 = vpop.xlane.xlu1 %296  ;;  %v294_v1 = vpop.xlane.xlu0 %293 }
 0x35d   :  { %1301 = vpow2.f32 %v302_v63  ;;  %v301_v2 = vsub.f32 %v285_v54, %v297_v0  ;;  %v300_v3 = vsub.f32 %v284_v56, %v294_v1 }
 0x35f   :  { %v308_v4 = vmul.f32 1.442695, %v301_v2  ;;  %v306_v6 = vmul.f32 1.442695, %v300_v3 }
 0x360   :  { %v1586_v8 = vpop.permute.xlu1 %463  ;;  %v462_v25 = vpop.permute.xlu0 %461 }
 0x361   :  { %1303 = vpow2.f32 %v308_v4  ;;  %v1595_v26 = vpack.i.bf16 %v462_v25, %v1523_v10 }
 0x362   :  { %1305 = vpow2.f32 %v306_v6 }
 0x364   :  { %v1588_v9 = vpop.permute.xlu1 %465 }
 0x365   :  { %v1601_v27 = vpack.i.bf16 %v1588_v9, %v1586_v8 }
 0x366   :  { %v1300_v11 = vpop.eup %1299 }
 0x367   :  { %v1302_v12 = vpop.eup %1301  ;;  %v313_v13 = vsel %vm63_vm0, %v1300_v11, 0.0 }
 0x368   :  { %314 = vadd.xlane.f32.xlu1 %v313_v13  ;;  %v1271_v14 = vpop.permute.xlu1 %1270  ;;  %v310_v15 = vsel %vm63_vm0, %v1302_v12, 0.0 }
 0x369   :  { %v1273_v16 = vunpack.i.h.bf16 %v1271_v14  ;;  %v1272_v18 = vunpack.i.l.bf16 %v1271_v14  ;;  %311 = vadd.xlane.f32.xlu0 %v310_v15 }
 0x36b   :  { %v1304_v19 = vpop.eup %1303  ;;  %v1204_v20 = vpack.c.bf16 %v1273_v16, %v1272_v18 }
 0x36c   :  { %v319_v22 = vsel %vm63_vm0, %v1304_v19, 0.0  ;;  %v1306_v23 = vpop.eup %1305 }
 0x36d   :  { %1205 = vmatprep.subr.bf16.mxu0 %v1204_v20  ;;  %320 = vadd.xlane.f32.xlu0 %v319_v22  ;;  %v316_v24 = vsel %vm63_vm0, %v1306_v23, 0.0 }
 0x36e   :  { %1207 = vmatpush3.bf16.msra.mxu0 %v1204_v20 }
 0x371   :  { %317 = vadd.xlane.f32.xlu0 %v316_v24 }
 0x379   :  { %1280 = vrot.lane.b32.xlu1 %v1595_v26, %s1415_s2 }
 0x37d   :  { %1285 = vrot.lane.b32.xlu1 %v1601_v27, %s1415_s2 }
 0x387   :  { %1275 = vrot.lane.b32.xlu0 %v1530_v17, %s1416_s21 }
 0x3f5   :  { %v315_v28 = vpop.xlane.xlu1 %314 }
 0x3f6   :  { %1307 = vrcp.f32 %v315_v28  ;;  %v312_v29 = vpop.xlane.xlu0 %311 }
 0x3f7   :  { %1309 = vrcp.f32 %v312_v29 }
 0x3f9   :  { %v1281_v33 = vpop.permute.xlu1 %1280 }
 0x3fa   :  { %v321_v30 = vpop.xlane.xlu0 %320  ;;  %v1283_v39 = vunpack.i.h.bf16 %v1281_v33  ;;  %v1282_v40 = vunpack.i.l.bf16 %v1281_v33 }
 0x3fb   :  { %1311 = vrcp.f32 %v321_v30 }
 0x3fc   :  { %v1212_v46 = vpack.c.bf16 %v1283_v39, %v1282_v40 }
 0x3fd   :  { %v1286_v49 = vpop.permute.xlu1 %1285 }
 0x3fe   :  { %v318_v31 = vpop.xlane.xlu0 %317  ;;  %v1288_v51 = vunpack.i.h.bf16 %v1286_v49  ;;  %v1287_v53 = vunpack.i.l.bf16 %v1286_v49 }
 0x3ff   :  { %1313 = vrcp.f32 %v318_v31 }
 0x400   :  { %v1308_v32 = vpop.eup %1307  ;;  %v1218_v54 = vpack.c.bf16 %v1288_v51, %v1287_v53  ;;  %v770_v53 = vld [vmem:[#allocation2] sm:$0xff] }
 0x401   :  { %v1310_v34 = vpop.eup %1309  ;;  %v325_v35 = vmul.f32 %v1308_v32, %v1300_v11 }
 0x402   :  { %v1276_v36 = vpop.permute.xlu0 %1275  ;;  %v323_v38 = vmul.f32 %v1310_v34, %v1302_v12 }
 0x403   :  { %331 = vst.msk [vmem:[#allocation6 + $0x8] sm:$0xff] %vm63_vm0, %v325_v35  ;;  %v1278_v42 = vunpack.i.h.bf16 %v1276_v36  ;;  %v1277_v17 = vunpack.i.l.bf16 %v1276_v36 }
 0x404   :  { %330 = vst.msk [vmem:[#allocation6] sm:$0xff] %vm63_vm0, %v323_v38  ;;  %1128 = vmatprep.mubr.msk.f32.mxu0 %vm63_vm0, %v323_v38 }
 0x405   :  { %v1312_v43 = vpop.eup %1311  ;;  %v1208_v44 = vpack.c.bf16 %v1278_v42, %v1277_v17 }
 0x406   :  { %v329_v45 = vmul.f32 %v1312_v43, %v1304_v19 }
 0x407   :  { %1209 = vmatprep.subr.bf16.mxu0 %v1208_v44 }
 0x408   :  { %1211 = vmatpush3.bf16.msra.mxu0 %v1208_v44  ;;  %333 = vst.msk [vmem:[#allocation6 + $0x18] sm:$0xff] %vm63_vm0, %v329_v45 }
 0x409   :  { %v1314_v47 = vpop.eup %1313  ;;  %1214 = vmatprep.subr.msk.bf16.mxu0 %vm1536_vm2, %v1212_v46 }
 0x40a   :  { %v327_v50 = vmul.f32 %v1314_v47, %v1306_v23 }
 0x40b   :  { %1129 = vmatmul.mubr.msk.f32.vlgmr.msra.gmra.mrb[2].mxu0 %vm63_vm0, %v325_v35 }
 0x40c   :  { %332 = vst.msk [vmem:[#allocation6 + $0x10] sm:$0xff] %vm63_vm0, %v327_v50  ;;  %1131 = vmatprep.mubr.msk.f32.mxu0 %vm63_vm0, %v327_v50 }
 0x40f   :  { %1132 = vmatmul.mubr.msk.f32.gmra.mrb[4].mxu0 %vm63_vm0, %v329_v45 }
 0x410   :  { %1142 = vmatprep.mubr.msk.f32.mxu0 %vm176_vm1, %v1523_v10 }
 0x411   :  { %1217 = vmatpush3.bf16.xpose.msk.msra.mxu0 %vm1536_vm2, %v1212_v46 }
 0x412   :  { %1220 = vmatprep.subr.msk.bf16.mxu0 %vm1536_vm2, %v1218_v54 }
 0x419   :  { %1223 = vmatpush3.bf16.xpose.msk.msra.mxu0 %vm1536_vm2, %v1218_v54  ;;  %v771_v54 = vld [vmem:[#allocation2 + $0x8] sm:$0xff] }
 0x420   :  { %1143 = vmatmul.mubr.msk.f32.vlgmr.msra.gmra.mrb[6].mxu0 %vm176_vm1, %v462_v25 }
 0x421   :  { %1145 = vmatprep.mubr.msk.f32.mxu0 %vm176_vm1, %v1586_v8 }
 0x424   :  { %1146 = vmatmul.mubr.msk.f32.gmra.mrb[8].mxu0 %vm176_vm1, %v1588_v9 }
 0x4de   :  { %v1130_v55 = vpop.f32.mrb[2].mxu0 }
 0x4df   :  { %v1630_v56 = vpop.f32.mrb[3].mxu0 }
 0x4e2   :  { %v1133_v10 = vpop.f32.mrb[4].mxu0 }
 0x4e3   :  { %v434_v57 = vpop.f32.mrb[5].mxu0 }
 0x4f3   :  { %v1144_v58 = vpop.f32.mrb[6].mxu0 }
 0x4f4   :  { %v577_v59 = vmul.f32 0.35355338, %v1144_v58  ;;  %v557_v60 = vpop.f32.mrb[7].mxu0  ;;  %v773_v58 = vld [vmem:[#allocation2 + $0x18] sm:$0xff] }
 0x4f5   :  { %v576_v61 = vmul.f32 0.35355338, %v557_v60 }
 0x4f6   :  { %v581_v21 = vsel %vm1551_vm3, %v577_v59, -inf }
 0x4f7   :  { %v1147_v62 = vpop.f32.mrb[8].mxu0  ;;  %v587_v63 = vsel %vm63_vm0, %v581_v21, -inf  ;;  %v580_v0 = vsel %vm1555_vm4, %v576_v61, -inf }
 0x4f8   :  { %588 = vmax.xlane.f32.xlu1 %v587_v63  ;;  %v567_v1 = vpop.f32.mrb[9].mxu0  ;;  %v584_v2 = vsel %vm63_vm0, %v580_v0, -inf  ;;  %v579_v3 = vmul.f32 0.35355338, %v1147_v62 }
 0x4f9   :  { %v578_v4 = vmul.f32 0.35355338, %v567_v1  ;;  %585 = vmax.xlane.f32.xlu0 %v584_v2 }
 0x4fa   :  { %v583_v37 = vsel %vm1564_vm5, %v579_v3, -inf }
 0x4fb   :  { %v582_v6 = vsel %vm1569_vm6, %v578_v4, -inf  ;;  %v593_v9 = vsel %vm63_vm0, %v583_v37, -inf }
 0x4fc   :  { %v590_v8 = vsel %vm63_vm0, %v582_v6, -inf }
 0x4fd   :  { %591 = vmax.xlane.f32.xlu0 %v590_v8 }
 0x501   :  { %594 = vmax.xlane.f32.xlu0 %v593_v9 }
 0x585   :  { %v589_v41 = vpop.xlane.xlu1 %588 }
 0x586   :  { %v597_v11 = vsub.f32 %v581_v21, %v589_v41  ;;  %v586_v12 = vpop.xlane.xlu0 %585  ;;  %v1421_v21 = vmov 0.0  }
 0x587   :  { %v596_v13 = vsub.f32 %v580_v0, %v586_v12  ;;  %1181 = vmatprep.mubr.msk.f32.mxu0 %vm1420_vm7, %v1421_v21 }
 0x588   :  { %v602_v14 = vmul.f32 1.442695, %v597_v11 }
 0x589   :  { %v600_v15 = vmul.f32 1.442695, %v596_v13 }
 0x58a   :  { %1315 = vpow2.f32 %v602_v14  ;;  %v592_v16 = vpop.xlane.xlu0 %591 }
 0x58b   :  { %1317 = vpow2.f32 %v600_v15  ;;  %v598_v52 = vsub.f32 %v582_v6, %v592_v16  ;;  %v765_v16 = vrot.slane %v1509_v5, 7  ;;  %v886_v5 = vld [vmem:[%s1734_s7] sm:$0xff] }
 0x58d   :  { %v604_v18 = vmul.f32 1.442695, %v598_v52  ;;  %v767_v52 = vrot.slane %v1516_v7, 6  ;;  %v887_v7 = vld [vmem:[%s1734_s7 + $0x8] sm:$0xff] }
 0x58e   :  { %v595_v19 = vpop.xlane.xlu0 %594 }
 0x58f   :  { %1319 = vpow2.f32 %v604_v18  ;;  %v599_v20 = vsub.f32 %v583_v37, %v595_v19  ;;  %v769_v18 = vsel %vm763_vm10, %v765_v16, %v767_v52 }
 0x591   :  { %v606_v22 = vmul.f32 1.442695, %v599_v20 }
 0x593   :  { %1321 = vpow2.f32 %v606_v22 }
 0x594   :  { %v1316_v48 = vpop.eup %1315 }
 0x595   :  { %v1318_v23 = vpop.eup %1317  ;;  %v611_v24 = vsel %vm63_vm0, %v1316_v48, 0.0 }
 0x596   :  { %612 = vadd.xlane.f32.xlu0 %v611_v24  ;;  %v608_v25 = vsel %vm63_vm0, %v1318_v23, 0.0 }
 0x597   :  { %609 = vadd.xlane.f32.xlu1 %v608_v25 }
 0x599   :  { %v1320_v28 = vpop.eup %1319 }
 0x59a   :  { %v614_v29 = vsel %vm63_vm0, %v1320_v28, 0.0 }
 0x59b   :  { %615 = vadd.xlane.f32.xlu1 %v614_v29 }
 0x59d   :  { %v1322_v30 = vpop.eup %1321 }
 0x59e   :  { %v617_v31 = vsel %vm63_vm0, %v1322_v30, 0.0 }
 0x59f   :  { %618 = vadd.xlane.f32.xlu0 %v617_v31  ;;  %v1239_v31 = vpack.c.bf16 %v887_v7, %v886_v5 }
 0x5ac   :  { %1290 = vrot.lane.b32.xlu1 %v1595_v26, %s1416_s21 }
 0x5b0   :  { %444 = vrot.lane.b32.xlu1 %v1130_v55, %s1411_s24  ;;  %v1233_v55 = vpack.c.bf16 %v771_v54, %v770_v53 }
 0x5b5   :  { %1295 = vrot.lane.b32.xlu0 %v1601_v27, %s1416_s21 }
 0x5b9   :  { %448 = vrot.lane.b32.xlu0 %v434_v57, %s1417_s22  ;;  %v772_v57 = vld [vmem:[#allocation2 + $0x10] sm:$0xff] }
 0x5ba   :  { %v1236_v59 = vpack.c.bf16 %v773_v58, %v772_v57 }
 0x5bd   :  { %452 = vrot.lane.b32.xlu0 %v1133_v10, %s1418_s25  ;;  %v1419_v10 = vmov 0.0|0.0  }
 0x5be   :  { %1238 = vmatprep.subr.bf16.mxu0 %v1419_v10 }
 0x5bf   :  { %1240 = vmatpush3.bf16.msra.mxu0 %v1239_v31 }
 0x5c0   :  { %1241 = vmatprep.subr.bf16.mxu0 %v1419_v10 }
 0x623   :  { %v613_v32 = vpop.xlane.xlu0 %612 }
 0x624   :  { %1323 = vrcp.f32 %v613_v32  ;;  %v610_v33 = vpop.xlane.xlu1 %609  ;;  %v888_v32 = vld [vmem:[%s1734_s7 + $0x10] sm:$0xff] }
 0x625   :  { %1325 = vrcp.f32 %v610_v33  ;;  %v889_v33 = vld [vmem:[%s1734_s7 + $0x18] sm:$0xff] }
 0x628   :  { %v616_v34 = vpop.xlane.xlu1 %615 }
 0x629   :  { %1327 = vrcp.f32 %v616_v34  ;;  %v1242_v34 = vpack.c.bf16 %v889_v33, %v888_v32 }
 0x62b   :  { %1243 = vmatpush3.bf16.msra.mxu0 %v1242_v34 }
 0x62c   :  { %v1291_v35 = vpop.permute.xlu1 %1290  ;;  %v619_v36 = vpop.xlane.xlu0 %618 }
 0x62d   :  { %v1293_v26 = vunpack.i.h.bf16 %v1291_v35  ;;  %v1292_v38 = vunpack.i.l.bf16 %v1291_v35  ;;  %1329 = vrcp.f32 %v619_v36 }
 0x62e   :  { %v1324_v39 = vpop.eup %1323 }
 0x62f   :  { %v1326_v40 = vpop.eup %1325  ;;  %v623_v27 = vmul.f32 %v1324_v39, %v1316_v48  ;;  %v1224_v42 = vpack.c.bf16 %v1293_v26, %v1292_v38  ;;  %v1043_v39 = vld [vmem:[%s1732_s5] ss:$0 sm:$0xff]  ;;  %s1422_s5 = smov [#allocation6]  }
 0x630   :  { %v1296_v17 = vpop.permute.xlu0 %1295  ;;  %v621_v43 = vmul.f32 %v1326_v40, %v1318_v23  ;;  %v445_v0 = vpop.permute.xlu1 %444 }
 0x631   :  { %630 = vst.msk [vmem:[#allocation6 + $0x28] sm:$0xff] %vm63_vm0, %v623_v27  ;;  %v1298_v44 = vunpack.i.h.bf16 %v1296_v17  ;;  %v1297_v45 = vunpack.i.l.bf16 %v1296_v17  ;;  %1225 = vmatprep.subr.bf16.mxu1 %v1224_v42  ;;  %v455_v6 = vsel %vm176_vm1, %v1630_v56, %v445_v0  ;;  %v1041_v56 = vld [vmem:[%s1731_s4] ss:$0 sm:$0xff] }
 0x632   :  { %1227 = vmatpush3.bf16.msra.mxu1 %v1224_v42  ;;  %629 = vst.msk [vmem:[#allocation6 + $0x20] sm:$0xff] %vm63_vm0, %v621_v43  ;;  %1156 = vmatprep.mubr.msk.f32.mxu1 %vm63_vm0, %v621_v43  ;;  %v1045_v43 = vld [vmem:[%s1735_s8] ss:$0 sm:$0xff] }
 0x633   :  { %v1328_v46 = vpop.eup %1327  ;;  %v1228_v47 = vpack.c.bf16 %v1298_v44, %v1297_v45 }
 0x634   :  { %v625_v49 = vmul.f32 %v1328_v46, %v1320_v28  ;;  %v449_v1 = vpop.permute.xlu0 %448 }
 0x635   :  { %1229 = vmatprep.subr.bf16.mxu1 %v1228_v47  ;;  %v457_v8 = vsel %vm456_vm8, %v455_v6, %v449_v1 }
 0x636   :  { %1231 = vmatpush3.bf16.msra.mxu1 %v1228_v47  ;;  %631 = vst.msk [vmem:[#allocation6 + $0x30] sm:$0xff] %vm63_vm0, %v625_v49 }
 0x637   :  { %v1330_v50 = vpop.eup %1329  ;;  %1232 = vmatprep.subr.bf16.mxu1 %v1419_v10 }
 0x638   :  { %v627_v51 = vmul.f32 %v1330_v50, %v1322_v30  ;;  %v453_v3 = vpop.permute.xlu0 %452 }
 0x639   :  { %1157 = vmatmul.mubr.msk.f32.vlgmr.msra.gmra.mrb[4].mxu1 %vm63_vm0, %v623_v27  ;;  %v459_v37 = vsel %vm458_vm9, %v457_v8, %v453_v3  ;;  %v1044_v27 = vld [vmem:[%s1733_s6] ss:$0 sm:$0xff]  ;;  %s998_s6 = sshll.u32 %s1422_s5, 4  ;;  %s999_s6 = int_to_ptr.vmem [resolvable:$true] %s998_s6 }
 0x63a   :  { %1159 = vmatprep.mubr.msk.f32.mxu1 %vm63_vm0, %v625_v49  ;;  %632 = vst.msk [vmem:[#allocation6 + $0x38] sm:$0xff] %vm63_vm0, %v627_v51  ;;  %1234 = vmatpush3.bf16.msra.mxu1 %v1233_v55  ;;  %v758_v13 = vrot.slane %v459_v37, 7  ;;  %s1359_s18 = scalar_lea.vmem %s999_s6, 1024  ;;  %p1364_p9 = scmp.lt.s32.totalorder %s999_s6, %s999_s6 }
 0x63b   :  { %1235 = vmatprep.subr.bf16.mxu1 %v1419_v10  ;;  %p1360_p8 = scmp.ne.s32.totalorder %s999_s6, %s1359_s18  ;;  %p1365_p10 = scmp.lt.s32.totalorder %s1359_s18, %s1359_s18 }
 0x63d   :  { %1160 = vmatmul.mubr.msk.f32.gmra.mrb[6].mxu1 %vm63_vm0, %v627_v51  ;;  %p1366_p11 = por %p1365_p10, %p1364_p9 }
 0x63e   :  { %1237 = vmatpush3.bf16.msra.mxu1 %v1236_v59  ;;  %1170 = vmatprep.mubr.msk.f32.mxu1 %vm1420_vm7, %v1421_v21 }
 0x63f   :  { %p1367_p12 = pnand %p1366_p11, %p1360_p8 }
 0x70c   :  { %v1158_v60 = vpop.f32.mrb[4].mxu1 }
 0x70d   :  { %743 = vrot.lane.b32.xlu1 %v1158_v60, %s1411_s24  ;;  %v723_v61 = vpop.f32.mrb[5].mxu1 }
 0x710   :  { %v1161_v62 = vpop.f32.mrb[6].mxu1 }
 0x711   :  { %v733_v63 = vpop.f32.mrb[7].mxu1 }
 0x712   :  { %747 = vrot.lane.b32.xlu1 %v733_v63, %s1417_s22 }
 0x716   :  { %751 = vrot.lane.b32.xlu1 %v1161_v62, %s1418_s25 }
 0x77f   :  { %v744_v2 = vpop.permute.xlu1 %743 }
 0x780   :  { %v754_v9 = vsel %vm176_vm1, %v723_v61, %v744_v2 }
 0x784   :  { %v748_v4 = vpop.permute.xlu1 %747 }
 0x785   :  { %v755_v41 = vsel %vm456_vm8, %v754_v9, %v748_v4 }
 0x788   :  { %v752_v11 = vpop.permute.xlu1 %751 }
 0x789   :  { %v756_v12 = vsel %vm458_vm9, %v755_v41, %v752_v11 }
 0x78a   :  { %v761_v14 = vrot.slane %v756_v12, 6 }
 0x78c   :  { %v764_v15 = vsel %vm763_vm10, %v758_v13, %v761_v14 }
 0x78d   :  { %1171 = vmatmul.mubr.msk.f32.vlgmr.msra.gmra.mrb[8].mxu1 %vm63_vm0, %v764_v15 }
 0x860   :  { %v850_v19 = vpop.f32.mrb[8].mxu1 }
 0x861   :  { %v851_v20 = vadd.f32 %v1041_v56, %v850_v19  ;;  %v1172_v22 = vpop.f32.mrb[9].mxu1 }
 0x863   :  { %v854_v48 = vadd.f32 %v851_v20, %v769_v18 }
 0x865   :  { %v856_v23 = vsel %vm855_vm11, %v854_v48, 0.0 }
 0x866   :  { %857 = vadd.xlane.f32.xlu0 %v856_v23 }
 0x8f3   :  { %v858_v24 = vpop.xlane.xlu0 %857 }
 0x8f4   :  { %v860_v25 = vmul.f32 0.03125, %v858_v24 }
 0x8f6   :  { %v861_v28 = vsub.f32 %v854_v48, %v860_v25 }
 0x8f8   :  { %v862_v29 = vmul.f32 %v861_v28, %v861_v28 }
 0x8fa   :  { %v863_v30 = vsel %vm855_vm11, %v862_v29, 0.0 }
 0x8fb   :  { %864 = vadd.xlane.f32.xlu1 %v863_v30 }
 0x988   :  { %v865_v35 = vpop.xlane.xlu1 %864 }
 0x989   :  { %v866_v36 = vmul.f32 0.03125, %v865_v35 }
 0x98b   :  { %v867_v26 = vadd.f32 1e-05, %v866_v36 }
 0x98d   :  { %1331 = vrsqrt.f32 %v867_v26 }
 0x997   :  { %v1332_v38 = vpop.eup %1331 }
 0x998   :  { %v869_v40 = vmul.f32 %v1332_v38, %v861_v28 }
 0x99a   :  { %v877_v42 = vmul.f32 %v1043_v39, %v869_v40 }
 0x99c   :  { %v885_v17 = vadd.f32 %v1044_v27, %v877_v42 }
 0x99e   :  { %1182 = vmatmul.mubr.msk.f32.vlgmr.msra.gmra.mrb[10].mxu0 %vm63_vm0, %v885_v17 }
 0xa71   :  { %v966_v44 = vpop.f32.mrb[10].mxu0 }
 0xa72   :  { %v967_v45 = vadd.f32 %v1045_v43, %v966_v44  ;;  %v1183_v46 = vpop.f32.mrb[11].mxu0 }
 0xa74   :  { %v971_v47 = vsel %vm970_vm12, %v967_v45, -inf }
 0xa75   :  { %972 = vmax.xlane.f32.xlu0 %v971_v47 }
 0xb02   :  { %v973_v49 = vpop.xlane.xlu0 %972 }
 0xb03   :  { %v974_v50 = vsub.f32 %v967_v45, %v973_v49 }
 0xb05   :  { %v975_v51 = vmul.f32 1.442695, %v974_v50 }
 0xb07   :  { %1333 = vpow2.f32 %v975_v51 }
 0xb11   :  { %v1334_v53 = vpop.eup %1333 }
 0xb12   :  { %v977_v54 = vsel %vm970_vm12, %v1334_v53, 0.0 }
 0xb13   :  { %978 = vadd.xlane.f32.xlu0 %v977_v54 }
 0xb14   :  { %1370 = shalt.err (!%p1367_p12)
}
 0xb15   :  { %s1371_s20 = scalar_lea.hbm %s1737_s10, 1024 }
 0xb16   :  { %p1372_p13 = scmp.ne.s32.totalorder %s1737_s10, %s1371_s20  ;;  %p1375_p0 = scmp.lt.u32.totalorder %s1371_s20, %s1737_s10 }
 0xb18   :  { %p1377_p1 = pnand %p1375_p0, %p1372_p13 }
 0xb1a   :  { %1380 = shalt.err (!%p1377_p1)
}
 0xb1b   :  { %1004 = dma.vmem_to_hbm [thread:$0]  %s999_s6, 1024, %s1737_s10, [#allocation7], %s1410_s23, %s1410_s23, %s1411_s24  }
 0xb1c   :  { %s1423_s27 = smov [#allocation5]  }
 0xb1d   :  { %s989_s28 = sshll.u32 %s1423_s27, 4  ;;  %s990_s28 = int_to_ptr.vmem [resolvable:$true] %s989_s28 }
 0xb1e   :  { %s1381_s29 = scalar_lea.vmem %s990_s28, 32  ;;  %p1386_p3 = scmp.lt.s32.totalorder %s990_s28, %s990_s28 }
 0xb1f   :  { %p1382_p2 = scmp.ne.s32.totalorder %s990_s28, %s1381_s29  ;;  %p1387_p4 = scmp.lt.s32.totalorder %s1381_s29, %s1381_s29 }
 0xb21   :  { %p1388_p5 = por %p1387_p4, %p1386_p3 }
 0xb23   :  { %p1389_p6 = pnand %p1388_p5, %p1382_p2 }
 0xba0   :  { %v979_v55 = vpop.xlane.xlu0 %978 }
 0xba1   :  { %1335 = vrcp.f32 %v979_v55 }
 0xbab   :  { %v1336_v10 = vpop.eup %1335 }
 0xbac   :  { %v981_v57 = vmul.f32 %v1336_v10, %v1334_v53 }
 0xbae   :  { %982 = vst.msk [vmem:[#allocation5] sm:$0x3] %vm970_vm12, %v981_v57 }
 0xbaf   :  { %1392 = shalt.err (!%p1389_p6)
}
 0xbb0   :  { %s1393_s10 = scalar_lea.hbm %s1736_s9, 32 }
 0xbb1   :  { %p1394_p7 = scmp.ne.s32.totalorder %s1736_s9, %s1393_s10  ;;  %p1397_p8 = scmp.lt.u32.totalorder %s1393_s10, %s1736_s9 }
 0xbb3   :  { %p1399_p9 = pnand %p1397_p8, %p1394_p7 }
 0xbb5   :  { %1402 = shalt.err (!%p1399_p9)
}
 0xbb6   :  { %992 = dma.vmem_to_hbm [thread:$0]  %s990_s28, 32, %s1736_s9, [#allocation4]  }
 0xbb7   :  { %1405 = dma.done.wait [#allocation4], 32  }
 0xbb8   :  { %1406 = vsyncadd [#allocation4], 4294967264 }
 0xbb9   :  { %1407 = dma.done.wait [#allocation7], 1024  }
 0xbba   :  { %1408 = vsyncadd [#allocation7], 4294966272 }
 0xbbb   :  { %1011 = vsyncpa [#allocation3], 1 }
 0xbbc   :  { %1012 = vsyncpa [#allocation4], 1 }
 0xbbd   :  { %1013 = vsyncpa [#allocation7], 1 }

</bundles_post_ra>
